<compile_context>
chip_gen: v6e
topology: v6e:2x2x1
jax: 0.10.0
libtpu: 0.0.40
codegen_flags: <defaults>
</compile_context>

<pallas_src>
import functools

import jax
import jax.numpy as jnp
from jax.experimental import pallas as pl
from jax.experimental.pallas import tpu as pltpu


def _round_up(x, m):
    return ((x + m - 1) // m) * m


def _mlp_kernel(n_layers, x_ref, *refs):
    """refs = (w1, b1, w2, b2, ..., wn, bn, out_ref)."""
    out_ref = refs[-1]
    wb = refs[:-1]

    h = x_ref[...]                                   # f32 activations (no redundant cast)
    for i in range(n_layers):
        w = wb[2 * i][...]                           # bf16 (or f32) weights, VMEM-resident
        b = wb[2 * i + 1][...]                       # (1, d_out) f32 bias row
        lhs = h.astype(w.dtype)                      # cast only the MXU operand
        h = jnp.dot(lhs, w, preferred_element_type=jnp.float32) + b
        if i < n_layers - 1:
            h = jnp.maximum(h, 0.0)                  # nn.ReLU(True)  -- f32 on the VPU
        else:
            h = jnp.tanh(h)                          # nn.Tanh()      -- f32 on the EUP
    out_ref[...] = h.astype(out_ref.dtype)


def mlp_forward(x, weights, biases, *, tile_m=128, use_bf16_matmul=True):
    """Fused MLP forward.

    x:        (batch, in_dim)        float32
    weights:  list of (d_in, d_out)  float32 (transposed vs. torch Linear)
    biases:   list of (d_out,)       float32
    returns:  (batch, out_dim)       float32
    """
    n_layers = len(weights)
    batch, in_dim = x.shape
    out_dim = weights[-1].shape[1]
    out_pad = _round_up(out_dim, 128)                # lane-dense output stores

    # ---- tile choice: big tiles, but keep >= 2 grid steps when possible (v7x 2 TCs)
    if tile_m > batch:
        tile_m = batch
    if batch // tile_m < 2 and tile_m % 16 == 0 and batch % (tile_m // 2) == 0:
        tile_m //= 2
    assert batch % tile_m == 0, "batch must be divisible by tile_m"
    assert tile_m % 8 == 0, "tile_m must be a multiple of 8 (f32 sublane tile)"

    # ---- pad the final layer's output dim with zeros (sliced off after the call)
    w_last, b_last = weights[-1], biases[-1]
    if out_pad != out_dim:
        w_last = jnp.pad(w_last, ((0, 0), (0, out_pad - out_dim)))
        b_last = jnp.pad(b_last, (0, out_pad - out_dim))
    weights = list(weights[:-1]) + [w_last]
    biases = list(biases[:-1]) + [b_last]

    # ---- weights feed the MXU: cast once in the wrapper (halves weight DMA bytes)
    w_dtype = jnp.bfloat16 if use_bf16_matmul else jnp.float32
    weights = [w.astype(w_dtype) for w in weights]
    biases2d = [b.reshape(1, -1).astype(jnp.float32) for b in biases]

    params = []
    for w, b in zip(weights, biases2d):
        params += [w, b]

    # Activation tiles are pipelined over the batch grid; every weight/bias is a
    # whole-array VMEM-resident block (no index_map, no double buffering).
    in_specs = [pl.BlockSpec((tile_m, in_dim), lambda i: (i, 0))]
    in_specs += [pl.BlockSpec(memory_space=pltpu.MemorySpace.VMEM)
                 for _ in range(2 * n_layers)]
    out_spec = pl.BlockSpec((tile_m, out_pad), lambda i: (i, 0))

    # ---- explicit VMEM budget: resident params + double-buffered act/out tiles
    param_bytes = int(sum(p.size * p.dtype.itemsize for p in params))
    act_bytes = 2 * 2 * (tile_m * in_dim * 4 + tile_m * out_pad * 4)
    vmem_limit = int(min(64 * 1024 * 1024,
                         max(param_bytes + act_bytes + (2 << 20), 4 << 20)))

    # ---- cost estimate for the XLA scheduler
    flops = int(2 * batch * sum(w.shape[0] * w.shape[1] for w in weights))
    transcendentals = int(batch * out_pad)                     # tanh
    bytes_accessed = int(x.size * x.dtype.itemsize + param_bytes
                         + batch * out_pad * 4)

    kernel = functools.partial(_mlp_kernel, n_layers)

    out = pl.pallas_call(
        kernel,
        out_shape=jax.ShapeDtypeStruct((batch, out_pad), jnp.float32),
        grid_spec=pltpu.PrefetchScalarGridSpec(
            num_scalar_prefetch=0,
            grid=(batch // tile_m,),
            in_specs=in_specs,
            out_specs=out_spec,
        ),
        compiler_params=pltpu.CompilerParams(
            dimension_semantics=("parallel",),
            vmem_limit_bytes=vmem_limit,
        ),
        cost_estimate=pl.CostEstimate(
            flops=flops,
            transcendentals=transcendentals,
            bytes_accessed=bytes_accessed,
        ),
    )(x, *params)

    return out[:, :out_dim] if out_pad != out_dim else out


def _mlp_reference(x, weights, biases, cast_dtype=None):
    """Pure-JAX reference. cast_dtype mimics the kernel's bf16 MXU operands."""
    h = x
    n = len(weights)
    for i, (w, b) in enumerate(zip(weights, biases)):
        if cast_dtype is not None:
            z = jnp.dot(h.astype(cast_dtype), w.astype(cast_dtype),
                        preferred_element_type=jnp.float32) + b
        else:
            z = h @ w + b
        h = jnp.maximum(z, 0.0) if i < n - 1 else jnp.tanh(z)
    return h


def _init_params(key, dims):
    """Deterministic init matching torch.nn.Linear shapes (stored transposed)."""
    weights, biases = [], []
    for i in range(len(dims) - 1):
        key, kw, kb = jax.random.split(key, 3)
        fan_in = dims[i]
        bound = 1.0 / (fan_in ** 0.5)
        w = jax.random.uniform(kw, (dims[i], dims[i + 1]),
                               minval=-bound, maxval=bound, dtype=jnp.float32)
        b = jax.random.uniform(kb, (dims[i + 1],),
                               minval=-bound, maxval=bound, dtype=jnp.float32)
        weights.append(w)
        biases.append(b)
    return weights, biases


if __name__ == "__main__":
    # MLP(in_dim=32, out_dim=16, h_dims=[64, 48]) -> Linear/ReLU/Linear/ReLU/Linear/Tanh
    in_dim, out_dim, h_dims = 32, 16, [64, 48]
    batch = 256                      # 2 grid steps of 128 rows each

    key = jax.random.PRNGKey(0)
    key, kx = jax.random.split(key)
    x = jax.random.normal(kx, (batch, in_dim), dtype=jnp.float32)

    dims = [in_dim] + h_dims + [out_dim]
    weights, biases = _init_params(key, dims)

    out = mlp_forward(x, weights, biases, tile_m=128, use_bf16_matmul=True)
    out = jax.block_until_ready(out)
    assert out.shape == (batch, out_dim)

    # Same-numerics reference (bf16 MXU operands, f32 accumulation & activations).
    ref_bf16 = _mlp_reference(x, weights, biases, cast_dtype=jnp.bfloat16)
    assert jnp.allclose(out, ref_bf16, atol=2e-3, rtol=2e-3), "mismatch vs bf16 reference"

    # Original f32 semantics; looser tolerance accounts for the bf16 operand cast.
    ref_f32 = _mlp_reference(x, weights, biases)
    assert jnp.allclose(out, ref_f32, atol=5e-2, rtol=5e-2), "mismatch vs f32 reference"

    print("KERNEL_OK")
</pallas_src>

<mosaic_0001>
module attributes {stable_mosaic.version = 11 : i64} {
  func.func @_mlp_kernel(%arg0: i32, %arg1: memref<128x32xf32, #tpu.memory_space<vmem>>, %arg2: memref<32x64xbf16, #tpu.memory_space<vmem>>, %arg3: memref<1x64xf32, #tpu.memory_space<vmem>>, %arg4: memref<64x48xbf16, #tpu.memory_space<vmem>>, %arg5: memref<1x48xf32, #tpu.memory_space<vmem>>, %arg6: memref<48x128xbf16, #tpu.memory_space<vmem>>, %arg7: memref<1x128xf32, #tpu.memory_space<vmem>>, %arg8: memref<128x128xf32, #tpu.memory_space<vmem>>) attributes {dimension_semantics = [#tpu.dimension_semantics<parallel>], iteration_bounds = array<i64: 2>, scalar_prefetch = 0 : i64, scratch_operands = 0 : i64, tpu.core_type = #tpu.core_type<tc>, window_params = [{transform_indices = @transform_0, window_bounds = array<i64: 128, 32>}, {pipeline_mode = #tpu.pipeline_mode<synchronous>, transform_indices = @transform_1, window_bounds = array<i64: 32, 64>}, {pipeline_mode = #tpu.pipeline_mode<synchronous>, transform_indices = @transform_2, window_bounds = array<i64: 1, 64>}, {pipeline_mode = #tpu.pipeline_mode<synchronous>, transform_indices = @transform_3, window_bounds = array<i64: 64, 48>}, {pipeline_mode = #tpu.pipeline_mode<synchronous>, transform_indices = @transform_4, window_bounds = array<i64: 1, 48>}, {pipeline_mode = #tpu.pipeline_mode<synchronous>, transform_indices = @transform_5, window_bounds = array<i64: 48, 128>}, {pipeline_mode = #tpu.pipeline_mode<synchronous>, transform_indices = @transform_6, window_bounds = array<i64: 1, 128>}, {transform_indices = @transform_7, window_bounds = array<i64: 128, 128>}]} {
    %c0 = arith.constant 0 : index
    %c0_0 = arith.constant 0 : index
    %0 = vector.load %arg1[%c0, %c0_0] : memref<128x32xf32, #tpu.memory_space<vmem>>, vector<128x32xf32>
    %c0_1 = arith.constant 0 : index
    %c0_2 = arith.constant 0 : index
    %1 = vector.load %arg2[%c0_1, %c0_2] : memref<32x64xbf16, #tpu.memory_space<vmem>>, vector<32x64xbf16>
    %c0_3 = arith.constant 0 : index
    %c0_4 = arith.constant 0 : index
    %2 = vector.load %arg3[%c0_3, %c0_4] : memref<1x64xf32, #tpu.memory_space<vmem>>, vector<1x64xf32>
    %3 = arith.truncf %0 : vector<128x32xf32> to vector<128x32xbf16>
    %cst = arith.constant dense<0.000000e+00> : vector<128x64xf32>
    %4 = tpu.matmul %3, %1, %cst {dimension_numbers = #tpu.dot_dimension_numbers<[1], [0], [0], [1], [0, 0, 1, 1], [], []>} : vector<128x32xbf16>, vector<32x64xbf16>, vector<128x64xf32> -> vector<128x64xf32>
    %5 = vector.broadcast %2 : vector<1x64xf32> to vector<128x64xf32>
    %6 = arith.addf %4, %5 : vector<128x64xf32>
    %cst_5 = arith.constant 0.000000e+00 : f32
    %7 = vector.broadcast %cst_5 : f32 to vector<128x64xf32>
    %8 = arith.maximumf %6, %7 : vector<128x64xf32>
    %c0_6 = arith.constant 0 : index
    %c0_7 = arith.constant 0 : index
    %9 = vector.load %arg4[%c0_6, %c0_7] : memref<64x48xbf16, #tpu.memory_space<vmem>>, vector<64x48xbf16>
    %c0_8 = arith.constant 0 : index
    %c0_9 = arith.constant 0 : index
    %10 = vector.load %arg5[%c0_8, %c0_9] : memref<1x48xf32, #tpu.memory_space<vmem>>, vector<1x48xf32>
    %11 = arith.truncf %8 : vector<128x64xf32> to vector<128x64xbf16>
    %cst_10 = arith.constant dense<0.000000e+00> : vector<128x48xf32>
    %12 = tpu.matmul %11, %9, %cst_10 {dimension_numbers = #tpu.dot_dimension_numbers<[1], [0], [0], [1], [0, 0, 1, 1], [], []>} : vector<128x64xbf16>, vector<64x48xbf16>, vector<128x48xf32> -> vector<128x48xf32>
    %13 = vector.broadcast %10 : vector<1x48xf32> to vector<128x48xf32>
    %14 = arith.addf %12, %13 : vector<128x48xf32>
    %cst_11 = arith.constant 0.000000e+00 : f32
    %15 = vector.broadcast %cst_11 : f32 to vector<128x48xf32>
    %16 = arith.maximumf %14, %15 : vector<128x48xf32>
    %c0_12 = arith.constant 0 : index
    %c0_13 = arith.constant 0 : index
    %17 = vector.load %arg6[%c0_12, %c0_13] : memref<48x128xbf16, #tpu.memory_space<vmem>>, vector<48x128xbf16>
    %c0_14 = arith.constant 0 : index
    %c0_15 = arith.constant 0 : index
    %18 = vector.load %arg7[%c0_14, %c0_15] : memref<1x128xf32, #tpu.memory_space<vmem>>, vector<1x128xf32>
    %19 = arith.truncf %16 : vector<128x48xf32> to vector<128x48xbf16>
    %cst_16 = arith.constant dense<0.000000e+00> : vector<128x128xf32>
    %20 = tpu.matmul %19, %17, %cst_16 {dimension_numbers = #tpu.dot_dimension_numbers<[1], [0], [0], [1], [0, 0, 1, 1], [], []>} : vector<128x48xbf16>, vector<48x128xbf16>, vector<128x128xf32> -> vector<128x128xf32>
    %21 = vector.broadcast %18 : vector<1x128xf32> to vector<128x128xf32>
    %22 = arith.addf %20, %21 : vector<128x128xf32>
    %23 = math.tanh %22 : vector<128x128xf32>
    %c0_17 = arith.constant 0 : index
    %c0_18 = arith.constant 0 : index
    %24 = vector.load %arg8[%c0_17, %c0_18] : memref<128x128xf32, #tpu.memory_space<vmem>>, vector<128x128xf32>
    tpu.vector_store %arg8[%c0_17, %c0_18], %23 {strides = array<i32>} : memref<128x128xf32, #tpu.memory_space<vmem>>, vector<128x128xf32>,
    return
  }
  func.func @transform_0(%arg0: i32) -> (i32, i32) {
    %c0_i32 = arith.constant 0 : i32
    %c0_i32_0 = arith.constant 0 : i32
    return %arg0, %c0_i32 : i32, i32
  }
  func.func @transform_1(%arg0: i32) -> (i32, i32) {
    %c0_i32 = arith.constant 0 : i32
    %c0_i32_0 = arith.constant 0 : i32
    %c0_i32_1 = arith.constant 0 : i32
    return %c0_i32, %c0_i32_0 : i32, i32
  }
  func.func @transform_2(%arg0: i32) -> (i32, i32) {
    %c0_i32 = arith.constant 0 : i32
    %c0_i32_0 = arith.constant 0 : i32
    %c0_i32_1 = arith.constant 0 : i32
    return %c0_i32, %c0_i32_0 : i32, i32
  }
  func.func @transform_3(%arg0: i32) -> (i32, i32) {
    %c0_i32 = arith.constant 0 : i32
    %c0_i32_0 = arith.constant 0 : i32
    %c0_i32_1 = arith.constant 0 : i32
    return %c0_i32, %c0_i32_0 : i32, i32
  }
  func.func @transform_4(%arg0: i32) -> (i32, i32) {
    %c0_i32 = arith.constant 0 : i32
    %c0_i32_0 = arith.constant 0 : i32
    %c0_i32_1 = arith.constant 0 : i32
    return %c0_i32, %c0_i32_0 : i32, i32
  }
  func.func @transform_5(%arg0: i32) -> (i32, i32) {
    %c0_i32 = arith.constant 0 : i32
    %c0_i32_0 = arith.constant 0 : i32
    %c0_i32_1 = arith.constant 0 : i32
    return %c0_i32, %c0_i32_0 : i32, i32
  }
  func.func @transform_6(%arg0: i32) -> (i32, i32) {
    %c0_i32 = arith.constant 0 : i32
    %c0_i32_0 = arith.constant 0 : i32
    %c0_i32_1 = arith.constant 0 : i32
    return %c0_i32, %c0_i32_0 : i32, i32
  }
  func.func @transform_7(%arg0: i32) -> (i32, i32) {
    %c0_i32 = arith.constant 0 : i32
    %c0_i32_0 = arith.constant 0 : i32
    return %arg0, %c0_i32 : i32, i32
  }
}

</mosaic_0001>

<bundles_post_ra>
// kernel: tpu_custom_call.1
= control target key start
LH: loop header
LB: loop body
LE: loop exit
PB: predicated region body
PF: predicated region fallthrough
CT: control target
= control target key end

     0   :  { %12 = vsyncpa [#allocation3], 0  ;;  %s1479_s0 = inlined_call_operand.vmem [shape: f32[256,32], index: 0, kind: input, shape index: {}]   ;;  %s1480_s1 = inlined_call_operand.vmem [shape: bf16[32,64], index: 1, kind: input, shape index: {}]   ;;  %s1481_s2 = inlined_call_operand.vmem [shape: f32[1,64], index: 2, kind: input, shape index: {}]   ;;  %s1482_s3 = inlined_call_operand.vmem [shape: bf16[64,48], index: 3, kind: input, shape index: {}]   ;;  %s1483_s4 = inlined_call_operand.vmem [shape: f32[1,48], index: 4, kind: input, shape index: {}]   ;;  %s1484_s5 = inlined_call_operand.vmem [shape: bf16[48,128], index: 5, kind: input, shape index: {}]   ;;  %s1485_s6 = inlined_call_operand.vmem [shape: f32[1,128], index: 6, kind: input, shape index: {}]   ;;  %s1486_s7 = inlined_call_operand.hbm [shape: f32[256,128], index: 7, kind: output, shape index: {}]  }
   0x1   :  { %14 = vsyncpa [#allocation3 + $0x1], 0  ;;  %s1259_s24 = smov 0   ;;  %s1261_s25 = smov 0  }
   0x2   :  { %s1263_s26 = smov 0   ;;  %s1265_s27 = smov 0  }
   0x3 LB: > { %s1280_s28 = sadd.s32 4294967295, %s1214_s27   ;;  %s920_s29 = sadd.s32 4294967294, %s1214_s27   ;;  %s1214_s27 = sphi %s1265_s27, %s1492_s27   ;;  %s1210_s26 = sphi %s1263_s26, %s1491_s26   ;;  %s1206_s25 = sphi %s1261_s25, %s1490_s25   ;;  %s1202_s24 = sphi %s1259_s24, %s1489_s24  }
   0x4   : > { %s1284_s30 = sadd.s32 1, %s1214_s27   ;;  %s179_s8 = sadd.s32 1, %s1210_s26 }
   0x5   : > { %s176_s9 = ssub.s32 %s1214_s27, %s1284_s30  ;;  %p189_p0 = scmp.ne.s32.totalorder %s1210_s26, %s1206_s25 }
   0x6   : > { %p177_p1 = scmp.eq.s32.totalorder %s176_s9, 0  ;;  %p190_p2 = scmp.eq.s32.totalorder %s1280_s28, 1 }
   0x7   : > { %p195_p3 = scmp.ne.s32.totalorder %s1206_s25, %s1202_s24  ;;  %p196_p4 = scmp.eq.s32.totalorder %s920_s29, 1 }
   0x8   : > { %s1295_s10 = scalar_select %p177_p1, %s1210_s26, %s179_s8  }
   0x9   : > { %p1297_p5 = por %p190_p2, %p189_p0  ;;  %p1301_p6 = por %p196_p4, %p195_p3 }
   0xa   : > { %p923_p7 = scmp.ge.s32.totalorder %s1214_s27, 1  ;;  %p241_p8 = scmp.lt.s32.totalorder %s1214_s27, 3 }
   0xc   : > { %p242_p9 = pnand %p923_p7, %p241_p8 }
   0xd   : > { %s925_s15 = sshll.u32 (!%p242_p9), %s1280_s28, 4  ;;  %s270_s14 = sand.u32 (!%p242_p9), 1, %s1206_s25  }
   0xe   : > { %245 = sbr.rel (%p242_p9) target bundleno = 693 (0x2b5), region = 48  ;;  %p274_p10 = scmp.lt.s32.totalorder (!%p242_p9), %s925_s15, 31 }
   0xf   : > { %s968_s17 = sshll.u32 (!%p242_p9), %s1280_s28, 11  ;;  %s1439_s22 = scalar_lea.sflag (!%p242_p9), [#allocation3], %s270_s14 }
  0x10   : > { %s1431_s21 = scalar_lea.hbm (!%p242_p9), %s1486_s7, %s968_s17 }
  0x13   : > { %v1113_v0 = vld [vmem:[%s1480_s1 + $0x8] sm:$0xff]   ;;  %v1114_v1 = vld [vmem:[%s1480_s1] sm:$0xff]   ;;  %s1494_s15 = smov (!%p274_p10, %s925_s15), 31  ;;  %v1115_v2 = vld [vmem:[%s1482_s3 + $0x18] sm:$0xff]   ;;  %vm328_vm0 = vcmask 261120   ;;  %vm513_vm1 = vcmask 523264  }
  0x14   : > { %1002 = vmatprep.subr.bf16.mxu0 %v1113_v0  ;;  %1068 = vmatprep.subr.bf16.mxu1 %v1113_v0  ;;  %s926_s20 = sshll.u32 %s1494_s15, 3  ;;  %v1116_v27 = vld [vmem:[%s1482_s3 + $0x10] sm:$0xff]   ;;  %v1117_v28 = vld [vmem:[%s1482_s3 + $0x8] sm:$0xff]   ;;  %v1118_v29 = vld [vmem:[%s1482_s3] sm:$0xff]   ;;  %vm690_vm2 = vcmask 392192   ;;  %s924_s15 = sshll.u32 %s270_s14, 7 }
  0x15   : > { %1003 = vmatpush3.bf16.msra.mxu0 %v1113_v0  ;;  %1070 = vmatpush3.bf16.msra.mxu1 %v1113_v0  ;;  %s1320_s23 = scalar_lea.vmem %s1479_s0, %s926_s20  ;;  %v1119_v30 = vld [vmem:[%s1484_s5 + $0x10] sm:$0xff]   ;;  %v927_v33 = vld [vmem:[%s1481_s2] ss:$0 sm:$0xff]  ;;  %s1402_s16 = scalar_lea.vmem [#allocation2], %s924_s15 }
  0x16   : > { %1004 = vmatprep.subr.bf16.mxu0 %v1114_v1  ;;  %1069 = vmatprep.subr.bf16.mxu1 %v1114_v1  ;;  %v281_v3 = vld [vmem:[%s1320_s23] sm:$0xff]  ;;  %v282_v4 = vld [vmem:[%s1320_s23 + $0x8] sm:$0xff]  ;;  %v283_v5 = vld [vmem:[%s1320_s23 + $0x10] sm:$0xff]  ;;  %s858_s18 = sshll.u32 %s1402_s16, 4  ;;  %s1433_s18 = int_to_ptr.vmem [resolvable:$true] %s858_s18 }
  0x17   : > { %v302_v6 = vpack.c.bf16 %v282_v4, %v281_v3  ;;  %v284_v7 = vld [vmem:[%s1320_s23 + $0x18] sm:$0xff]  ;;  %v285_v8 = vld [vmem:[%s1320_s23 + $0x20] sm:$0xff]  ;;  %v286_v9 = vld [vmem:[%s1320_s23 + $0x28] sm:$0xff]  ;;  %s1154_s28 = scalar_lea.vmem %s1433_s18, 2048 }
  0x18   : > { %v303_v10 = vpack.c.bf16 %v284_v7, %v283_v5  ;;  %v304_v11 = vpack.c.bf16 %v286_v9, %v285_v8  ;;  %v289_v12 = vld [vmem:[%s1320_s23 + $0x40] sm:$0xff]  ;;  %v290_v13 = vld [vmem:[%s1320_s23 + $0x48] sm:$0xff]  ;;  %v291_v14 = vld [vmem:[%s1320_s23 + $0x50] sm:$0xff]  ;;  %p1155_p11 = scmp.ne.s32.totalorder %s1433_s18, %s1154_s28 }
  0x19   : > { %1005 = vmatpush3.bf16.msra.mxu0 %v1114_v1  ;;  %1071 = vmatpush3.bf16.msra.mxu1 %v1114_v1  ;;  %v292_v15 = vld [vmem:[%s1320_s23 + $0x58] sm:$0xff]  ;;  %v287_v16 = vld [vmem:[%s1320_s23 + $0x30] sm:$0xff]  ;;  %v306_v17 = vpack.c.bf16 %v290_v13, %v289_v12  ;;  %v293_v19 = vld [vmem:[%s1320_s23 + $0x60] sm:$0xff] }
  0x1a   : > { %1022 = vmatprep.subr.bf16.mxu1 %v1115_v2  ;;  %1006 = vmatprep.mubr.msk.bf16.mxu0 %vm328_vm0, %v302_v6  ;;  %v307_v18 = vpack.c.bf16 %v292_v15, %v291_v14  ;;  %v294_v20 = vld [vmem:[%s1320_s23 + $0x68] sm:$0xff]  ;;  %v288_v21 = vld [vmem:[%s1320_s23 + $0x38] sm:$0xff]  ;;  %v295_v24 = vld [vmem:[%s1320_s23 + $0x70] sm:$0xff]  ;;  %p1156_p12 = pnand %p1155_p11, %p1297_p5 }
  0x1b   : > { %v308_v22 = vpack.c.bf16 %v294_v20, %v293_v19  ;;  %1014 = vmatprep.mubr.msk.bf16.mxu1 %vm328_vm0, %v306_v17  ;;  %v305_v23 = vpack.c.bf16 %v288_v21, %v287_v16  ;;  %v296_v25 = vld [vmem:[%s1320_s23 + $0x78] sm:$0xff]  ;;  %1046 = vmatprep.subr.bf16.mxu0 %v1119_v30  ;;  %s1216_s23 = smov [#allocation2]  }
  0x1c   : > { %1007 = vmatmul.mubr.msk.bf16.vlgmr.msra.gmra.mxu0 %vm328_vm0, %v303_v10  ;;  %1015 = vmatmul.mubr.msk.bf16.vlgmr.msra.gmra.mxu1 %vm328_vm0, %v307_v18  ;;  %v309_v26 = vpack.c.bf16 %v296_v25, %v295_v24  ;;  %v1120_v24 = vld [vmem:[%s1484_s5 + $0x8] sm:$0xff]   ;;  %v1121_v25 = vld [vmem:[%s1484_s5] sm:$0xff]   ;;  %p1157_p13 = pneg %p1156_p12  ;;  %s1158_s29 = sshll.u32 %s1216_s23, 4  ;;  %s1159_s29 = int_to_ptr.vmem [resolvable:$false] %s1158_s29 }
  0x1d   : > { %1010 = vmatprep.mubr.msk.bf16.mxu0 %vm328_vm0, %v304_v11  ;;  %1018 = vmatprep.mubr.msk.bf16.mxu1 %vm328_vm0, %v308_v22  ;;  %s1160_s8 = scalar_lea.vmem %s1159_s29, 4096  ;;  %p1161_p0 = scmp.lt.s32.totalorder %s1433_s18, %s1159_s29 }
  0x1e   : > { %1023 = vmatpush3.bf16.msra.mxu1 %v1115_v2  ;;  %1047 = vmatpush3.bf16.msra.mxu0 %v1119_v30  ;;  %p1162_p1 = scmp.lt.s32.totalorder %s1160_s8, %s1154_s28 }
  0x1f   : > { %1024 = vmatprep.subr.bf16.mxu1 %v1116_v27  ;;  %1048 = vmatprep.subr.bf16.mxu0 %v1120_v24 }
  0x20   : > { %p1163_p2 = por %p1162_p1, %p1161_p0 }
  0x22   : > { %1025 = vmatpush3.bf16.msra.mxu1 %v1116_v27  ;;  %1049 = vmatpush3.bf16.msra.mxu0 %v1120_v24  ;;  %p1164_p3 = pnand %p1163_p2, %p1157_p13 }
  0x23   : > { %1026 = vmatprep.subr.bf16.mxu1 %v1117_v28  ;;  %1050 = vmatprep.subr.bf16.mxu0 %v1121_v25 }
  0x24   : > { %1011 = vmatmul.mubr.msk.bf16.gmra.mxu0 %vm328_vm0, %v305_v23  ;;  %1019 = vmatmul.mubr.msk.bf16.gmra.mxu1 %vm328_vm0, %v309_v26 }
  0x26   : > { %1027 = vmatpush3.bf16.msra.mxu1 %v1117_v28  ;;  %1051 = vmatpush3.bf16.msra.mxu0 %v1121_v25  ;;  %v938_v28 = vld [vmem:[%s1483_s4] ss:$0 sm:$0xff] }
  0x27   : > { %1028 = vmatprep.subr.bf16.mxu1 %v1118_v29 }
  0x2a   : > { %1029 = vmatpush3.bf16.msra.mxu1 %v1118_v29 }
  0xdc   : > { %v1008_v31 = vpop.f32.mrf.mxu0  ;;  %v1016_v34 = vpop.f32.mrf.mxu1 }
  0xdd   : > { %v396_v39 = vadd.f32 %v1008_v31, %v927_v33  ;;  %v428_v10 = vadd.f32 %v1016_v34, %v927_v33 }
  0xde   : > { %v387_v32 = vpop.f32.mrf.mxu0  ;;  %v419_v38 = vpop.f32.mrf.mxu1 }
  0xdf   : > { %v388_v36 = vadd.f32 %v927_v33, %v387_v32  ;;  %v452_v48 = vmax.f32 %v396_v39, 0.0  ;;  %v420_v51 = vadd.f32 %v927_v33, %v419_v38  ;;  %v460_v15 = vmax.f32 %v428_v10, 0.0 }
  0xe0   : > { %v1009_v35 = vpop.f32.mrf.mxu0  ;;  %v1017_v42 = vpop.f32.mrf.mxu1 }
  0xe1   : > { %v399_v37 = vadd.f32 %v1009_v35, %v927_v33  ;;  %v450_v45 = vmax.f32 %v388_v36, 0.0  ;;  %v458_v61 = vmax.f32 %v420_v51, 0.0  ;;  %v431_v12 = vadd.f32 %v1017_v42, %v927_v33 }
  0xe2   : > { %v390_v40 = vpop.f32.mrf.mxu0  ;;  %v422_v47 = vpop.f32.mrf.mxu1 }
  0xe3   : > { %v391_v41 = vadd.f32 %v927_v33, %v390_v40  ;;  %v453_v43 = vmax.f32 %v399_v37, 0.0  ;;  %v423_v52 = vadd.f32 %v927_v33, %v422_v47  ;;  %v461_v16 = vmax.f32 %v431_v12, 0.0 }
  0xe4   : > { %v1012_v44 = vpop.f32.mrf.mxu0  ;;  %v1020_v53 = vpop.f32.mrf.mxu1 }
  0xe5   : > { %v451_v46 = vmax.f32 %v391_v41, 0.0  ;;  %v476_v54 = vpack.c.bf16 %v453_v43, %v452_v48  ;;  %v412_v59 = vadd.f32 %v1012_v44, %v927_v33  ;;  %v459_v63 = vmax.f32 %v423_v52, 0.0 }
  0xe6   : > { %v403_v49 = vpop.f32.mrf.mxu0  ;;  %v435_v58 = vpop.f32.mrf.mxu1  ;;  %v480_v18 = vpack.c.bf16 %v461_v16, %v460_v15  ;;  %v444_v19 = vadd.f32 %v1020_v53, %v927_v33 }
  0xe7   : > { %v475_v50 = vpack.c.bf16 %v451_v46, %v450_v45  ;;  %v404_v56 = vadd.f32 %v927_v33, %v403_v49  ;;  %v456_v5 = vmax.f32 %v412_v59, 0.0  ;;  %v479_v7 = vpack.c.bf16 %v459_v63, %v458_v61 }
  0xe8   : > { %v1013_v55 = vpop.f32.mrf.mxu0  ;;  %v1021_v0 = vpop.f32.mrf.mxu1  ;;  %v436_v8 = vadd.f32 %v927_v33, %v435_v58  ;;  %v464_v21 = vmax.f32 %v444_v19, 0.0  ;;  %v1389_v19 = vld [vmem:[%s1485_s6] ss:$0 sm:$0xff] }
  0xe9   : > { %v415_v57 = vadd.f32 %v1013_v55, %v927_v33  ;;  %1030 = vmatprep.mubr.msk.bf16.mxu1 %vm513_vm1, %v475_v50  ;;  %v454_v2 = vmax.f32 %v404_v56, 0.0  ;;  %v447_v20 = vadd.f32 %v1021_v0, %v927_v33 }
  0xea   : > { %v406_v60 = vpop.f32.mrf.mxu0  ;;  %1031 = vmatmul.mubr.msk.bf16.vlgmr.msra.gmra.mxu1 %vm513_vm1, %v476_v54  ;;  %v438_v4 = vpop.f32.mrf.mxu1  ;;  %v462_v13 = vmax.f32 %v436_v8, 0.0 }
  0xeb   : > { %v407_v62 = vadd.f32 %v927_v33, %v406_v60  ;;  %v457_v1 = vmax.f32 %v415_v57, 0.0  ;;  %v439_v9 = vadd.f32 %v927_v33, %v438_v4  ;;  %v465_v22 = vmax.f32 %v447_v20, 0.0 }
  0xed   : > { %v455_v3 = vmax.f32 %v407_v62, 0.0  ;;  %v478_v11 = vpack.c.bf16 %v457_v1, %v456_v5  ;;  %v463_v14 = vmax.f32 %v439_v9, 0.0  ;;  %v482_v23 = vpack.c.bf16 %v465_v22, %v464_v21 }
  0xef   : > { %v477_v6 = vpack.c.bf16 %v455_v3, %v454_v2  ;;  %v481_v17 = vpack.c.bf16 %v463_v14, %v462_v13 }
  0xf1   : > { %1034 = vmatprep.mubr.msk.bf16.mxu1 %vm513_vm1, %v477_v6 }
  0xf2   : > { %1035 = vmatmul.mubr.msk.bf16.gmra.mxu1 %vm513_vm1, %v478_v11 }
  0xf3   : > { %1038 = vmatprep.mubr.msk.bf16.mxu1 %vm513_vm1, %v479_v7 }
  0xfa   : > { %1039 = vmatmul.mubr.msk.bf16.gmra.mxu1 %vm513_vm1, %v480_v18 }
  0xfb   : > { %1042 = vmatprep.mubr.msk.bf16.mxu1 %vm513_vm1, %v481_v17 }
 0x102   : > { %1043 = vmatmul.mubr.msk.bf16.gmra.mxu1 %vm513_vm1, %v482_v23 }
 0x1aa   : > { %v1032_v26 = vpop.f32.mrf.mxu1 }
 0x1ab   : > { %v581_v32 = vadd.f32 %v1032_v26, %v938_v28 }
 0x1ac   : > { %v572_v27 = vpop.f32.mrf.mxu1 }
 0x1ad   : > { %v573_v30 = vadd.f32 %v938_v28, %v572_v27  ;;  %v637_v39 = vmax.f32 %v581_v32, 0.0 }
 0x1ae   : > { %v1033_v29 = vpop.f32.mrf.mxu1 }
 0x1af   : > { %v584_v31 = vadd.f32 %v1033_v29, %v938_v28  ;;  %v635_v37 = vmax.f32 %v573_v30, 0.0 }
 0x1b0   : > { %v575_v33 = vpop.f32.mrf.mxu1 }
 0x1b1   : > { %v576_v34 = vadd.f32 %v938_v28, %v575_v33  ;;  %v638_v35 = vmax.f32 %v584_v31, 0.0 }
 0x1b2   : > { %v1036_v36 = vpop.f32.mrf.mxu1 }
 0x1b3   : > { %v636_v38 = vmax.f32 %v576_v34, 0.0  ;;  %v659_v42 = vpack.c.bf16 %v638_v35, %v637_v39  ;;  %v597_v46 = vadd.f32 %v1036_v36, %v938_v28 }
 0x1b4   : > { %v588_v40 = vpop.f32.mrf.mxu1 }
 0x1b5   : > { %v658_v41 = vpack.c.bf16 %v636_v38, %v635_v37  ;;  %v589_v44 = vadd.f32 %v938_v28, %v588_v40  ;;  %v641_v53 = vmax.f32 %v597_v46, 0.0 }
 0x1b6   : > { %v1037_v43 = vpop.f32.mrf.mxu1 }
 0x1b7   : > { %v600_v45 = vadd.f32 %v1037_v43, %v938_v28  ;;  %1052 = vmatprep.mubr.msk.bf16.mxu0 %vm690_vm2, %v658_v41  ;;  %v639_v51 = vmax.f32 %v589_v44, 0.0 }
 0x1b8   : > { %v591_v47 = vpop.f32.mrf.mxu1  ;;  %1053 = vmatmul.mubr.msk.bf16.vlgmr.msra.gmra.mxu0 %vm690_vm2, %v659_v42 }
 0x1b9   : > { %v592_v48 = vadd.f32 %v938_v28, %v591_v47  ;;  %v642_v49 = vmax.f32 %v600_v45, 0.0 }
 0x1ba   : > { %v1040_v50 = vpop.f32.mrf.mxu1 }
 0x1bb   : > { %v640_v52 = vmax.f32 %v592_v48, 0.0  ;;  %v661_v56 = vpack.c.bf16 %v642_v49, %v641_v53  ;;  %v613_v60 = vadd.f32 %v1040_v50, %v938_v28 }
 0x1bc   : > { %v604_v54 = vpop.f32.mrf.mxu1 }
 0x1bd   : > { %v660_v55 = vpack.c.bf16 %v640_v52, %v639_v51  ;;  %v605_v58 = vadd.f32 %v938_v28, %v604_v54  ;;  %v645_v3 = vmax.f32 %v613_v60, 0.0 }
 0x1be   : > { %v1041_v57 = vpop.f32.mrf.mxu1 }
 0x1bf   : > { %v616_v59 = vadd.f32 %v1041_v57, %v938_v28  ;;  %1056 = vmatprep.mubr.msk.bf16.mxu0 %vm690_vm2, %v660_v55  ;;  %v643_v1 = vmax.f32 %v605_v58, 0.0 }
 0x1c0   : > { %v607_v61 = vpop.f32.mrf.mxu1  ;;  %1057 = vmatmul.mubr.msk.bf16.gmra.mxu0 %vm690_vm2, %v661_v56 }
 0x1c1   : > { %v608_v62 = vadd.f32 %v938_v28, %v607_v61  ;;  %v646_v63 = vmax.f32 %v616_v59, 0.0 }
 0x1c2   : > { %v1044_v0 = vpop.f32.mrf.mxu1 }
 0x1c3   : > { %v644_v2 = vmax.f32 %v608_v62, 0.0  ;;  %v663_v6 = vpack.c.bf16 %v646_v63, %v645_v3  ;;  %v629_v10 = vadd.f32 %v1044_v0, %v938_v28 }
 0x1c4   : > { %v620_v4 = vpop.f32.mrf.mxu1 }
 0x1c5   : > { %v662_v5 = vpack.c.bf16 %v644_v2, %v643_v1  ;;  %v621_v8 = vadd.f32 %v938_v28, %v620_v4  ;;  %v649_v16 = vmax.f32 %v629_v10, 0.0 }
 0x1c6   : > { %v1045_v7 = vpop.f32.mrf.mxu1 }
 0x1c7   : > { %v632_v9 = vadd.f32 %v1045_v7, %v938_v28  ;;  %1060 = vmatprep.mubr.msk.bf16.mxu0 %vm690_vm2, %v662_v5  ;;  %v647_v14 = vmax.f32 %v621_v8, 0.0 }
 0x1c8   : > { %v623_v11 = vpop.f32.mrf.mxu1  ;;  %1061 = vmatmul.mubr.msk.bf16.gmra.mxu0 %vm690_vm2, %v663_v6 }
 0x1c9   : > { %v624_v12 = vadd.f32 %v938_v28, %v623_v11  ;;  %v650_v13 = vmax.f32 %v632_v9, 0.0 }
 0x1cb   : > { %v648_v15 = vmax.f32 %v624_v12, 0.0  ;;  %v665_v18 = vpack.c.bf16 %v650_v13, %v649_v16 }
 0x1cd   : > { %v664_v17 = vpack.c.bf16 %v648_v15, %v647_v14 }
 0x1cf   : > { %1064 = vmatprep.mubr.msk.bf16.mxu0 %vm690_vm2, %v664_v17 }
 0x1d0   : > { %1065 = vmatmul.mubr.msk.bf16.gmra.mxu0 %vm690_vm2, %v665_v18 }
 0x278   : > { %v1054_v20 = vpop.f32.mrf.mxu0 }
 0x279   : > { %v758_v21 = vadd.f32 %v1054_v20, %v1389_v19 }
 0x27a   : > { %v749_v22 = vpop.f32.mrf.mxu0 }
 0x27b   : > { %1122 = vtanh.f32 %v758_v21  ;;  %v750_v23 = vadd.f32 %v1389_v19, %v749_v22 }
 0x27c   : > { %v1055_v24 = vpop.f32.mrf.mxu0 }
 0x27d   : > { %1124 = vtanh.f32 %v750_v23  ;;  %v761_v25 = vadd.f32 %v1055_v24, %v1389_v19 }
 0x27e   : > { %v752_v26 = vpop.f32.mrf.mxu0 }
 0x27f   : > { %1126 = vtanh.f32 %v761_v25  ;;  %v753_v27 = vadd.f32 %v1389_v19, %v752_v26 }
 0x280   : > { %v1058_v28 = vpop.f32.mrf.mxu0 }
 0x281   : > { %1128 = vtanh.f32 %v753_v27  ;;  %v774_v29 = vadd.f32 %v1058_v28, %v1389_v19 }
 0x282   : > { %v765_v30 = vpop.f32.mrf.mxu0 }
 0x283   : > { %1130 = vtanh.f32 %v774_v29  ;;  %v766_v31 = vadd.f32 %v1389_v19, %v765_v30 }
 0x284   : > { %v1059_v32 = vpop.f32.mrf.mxu0 }
 0x285   : > { %1132 = vtanh.f32 %v766_v31  ;;  %v777_v33 = vadd.f32 %v1059_v32, %v1389_v19 }
 0x286   : > { %v768_v34 = vpop.f32.mrf.mxu0 }
 0x287   : > { %1134 = vtanh.f32 %v777_v33  ;;  %v769_v35 = vadd.f32 %v1389_v19, %v768_v34 }
 0x288   : > { %v1123_v36 = vpop.eup %1122  ;;  %v1062_v37 = vpop.f32.mrf.mxu0 }
 0x289   : > { %830 = vst [vmem:[%s1402_s16 + $0x10] sm:$0xff] %v1123_v36  ;;  %1136 = vtanh.f32 %v769_v35  ;;  %v790_v38 = vadd.f32 %v1062_v37, %v1389_v19 }
 0x28a   : > { %v1125_v39 = vpop.eup %1124  ;;  %v781_v40 = vpop.f32.mrf.mxu0 }
 0x28b   : > { %828 = vst [vmem:[%s1402_s16] sm:$0xff] %v1125_v39  ;;  %1138 = vtanh.f32 %v790_v38  ;;  %v782_v41 = vadd.f32 %v1389_v19, %v781_v40 }
 0x28c   : > { %v1127_v42 = vpop.eup %1126  ;;  %v1063_v43 = vpop.f32.mrf.mxu0 }
 0x28d   : > { %831 = vst [vmem:[%s1402_s16 + $0x18] sm:$0xff] %v1127_v42  ;;  %1140 = vtanh.f32 %v782_v41  ;;  %v793_v44 = vadd.f32 %v1063_v43, %v1389_v19 }
 0x28e   : > { %v1129_v45 = vpop.eup %1128  ;;  %v784_v46 = vpop.f32.mrf.mxu0 }
 0x28f   : > { %829 = vst [vmem:[%s1402_s16 + $0x8] sm:$0xff] %v1129_v45  ;;  %1142 = vtanh.f32 %v793_v44  ;;  %v785_v47 = vadd.f32 %v1389_v19, %v784_v46 }
 0x290   : > { %v1131_v48 = vpop.eup %1130  ;;  %v1066_v49 = vpop.f32.mrf.mxu0 }
 0x291   : > { %834 = vst [vmem:[%s1402_s16 + $0x30] sm:$0xff] %v1131_v48  ;;  %1144 = vtanh.f32 %v785_v47  ;;  %v806_v50 = vadd.f32 %v1066_v49, %v1389_v19 }
 0x292   : > { %v1133_v51 = vpop.eup %1132  ;;  %v797_v52 = vpop.f32.mrf.mxu0 }
 0x293   : > { %832 = vst [vmem:[%s1402_s16 + $0x20] sm:$0xff] %v1133_v51  ;;  %1146 = vtanh.f32 %v806_v50  ;;  %v798_v53 = vadd.f32 %v1389_v19, %v797_v52 }
 0x294   : > { %v1135_v54 = vpop.eup %1134  ;;  %v1067_v55 = vpop.f32.mrf.mxu0 }
 0x295   : > { %835 = vst [vmem:[%s1402_s16 + $0x38] sm:$0xff] %v1135_v54  ;;  %1148 = vtanh.f32 %v798_v53  ;;  %v809_v56 = vadd.f32 %v1067_v55, %v1389_v19 }
 0x296   : > { %v1137_v57 = vpop.eup %1136  ;;  %v800_v58 = vpop.f32.mrf.mxu0 }
 0x297   : > { %833 = vst [vmem:[%s1402_s16 + $0x28] sm:$0xff] %v1137_v57  ;;  %1150 = vtanh.f32 %v809_v56  ;;  %v801_v59 = vadd.f32 %v1389_v19, %v800_v58 }
 0x298   : > { %v1139_v60 = vpop.eup %1138 }
 0x299   : > { %838 = vst [vmem:[%s1402_s16 + $0x50] sm:$0xff] %v1139_v60  ;;  %1152 = vtanh.f32 %v801_v59 }
 0x29a   : > { %v1141_v61 = vpop.eup %1140 }
 0x29b   : > { %836 = vst [vmem:[%s1402_s16 + $0x40] sm:$0xff] %v1141_v61 }
 0x29c   : > { %v1143_v62 = vpop.eup %1142 }
 0x29d   : > { %839 = vst [vmem:[%s1402_s16 + $0x58] sm:$0xff] %v1143_v62 }
 0x29e   : > { %v1145_v63 = vpop.eup %1144 }
 0x29f   : > { %837 = vst [vmem:[%s1402_s16 + $0x48] sm:$0xff] %v1145_v63 }
 0x2a0   : > { %v1147_v0 = vpop.eup %1146 }
 0x2a1   : > { %842 = vst [vmem:[%s1402_s16 + $0x70] sm:$0xff] %v1147_v0 }
 0x2a2   : > { %v1149_v1 = vpop.eup %1148 }
 0x2a3   : > { %840 = vst [vmem:[%s1402_s16 + $0x60] sm:$0xff] %v1149_v1 }
 0x2a4   : > { %v1151_v2 = vpop.eup %1150 }
 0x2a5   : > { %843 = vst [vmem:[%s1402_s16 + $0x78] sm:$0xff] %v1151_v2 }
 0x2a6   : > { %v1153_v3 = vpop.eup %1152 }
 0x2a7   : > { %841 = vst [vmem:[%s1402_s16 + $0x68] sm:$0xff] %v1153_v3 }
 0x2a8   : > { %1167 = shalt.err (!%p1164_p3)
}
 0x2a9   : > { %s1168_s9 = scalar_lea.hbm %s1431_s21, 2048  ;;  %s1172_s15 = scalar_lea.hbm %s1486_s7, 4096 }
 0x2aa   : > { %p1169_p4 = scmp.ne.s32.totalorder %s1431_s21, %s1168_s9  ;;  %p1173_p9 = scmp.lt.s32.totalorder %s1431_s21, %s1486_s7 }
 0x2ab   : > { %p1174_p10 = scmp.lt.s32.totalorder %s1172_s15, %s1168_s9 }
 0x2ac   : > { %p1170_p7 = pnand %p1169_p4, %p1297_p5 }
 0x2ad   : > { %p1175_p11 = por %p1174_p10, %p1173_p9 }
 0x2ae   : > { %p1171_p8 = pneg %p1170_p7 }
 0x2b0   : > { %p1176_p12 = pnand %p1175_p11, %p1171_p8 }
 0x2b2   : > { %1179 = shalt.err (!%p1176_p12)
}
 0x2b3   : > { %s1217_s19 = smov 128   ;;  %s1218_s20 = smov 8  }
 0x2b4   : > { %1072 = dma.vmem_to_hbm [thread:$0]  (%p1297_p5), %s1433_s18, 2048, %s1431_s21, %s1439_s22, %s1217_s19, %s1217_s19, %s1218_s20  }
 0x2b5 PF: > { %p1078_p13 = scmp.ge.s32.totalorder %s1214_s27, 2  ;;  %s873_s28 = sand.u32 1, %s1202_s24  }
 0x2b6   : > { %s874_s23 = scalar_lea.sflag [#allocation3], %s873_s28 }
 0x2b7   : > { %p1075_p0 = pnand %p1078_p13, %p1301_p6 }
 0x2b9   : > { %p1076_p1 = pneg %p1075_p0 }
 0x2bb   : > { %1197 = dma.done.wait (%p1076_p1), %s874_s23, 2048  }
 0x2bc   : > { %1199 = vsyncadd (%p1076_p1), %s874_s23, 4294965248  ;;  %p17_p2 = scmp.ge.s32.totalorder %s1284_s30, 4   ;;  %s1489_s24 = smov %s1206_s25 }
 0x2bd   : > { %s1490_s25 = smov %s1210_s26  ;;  %s1491_s26 = smov %s1295_s10 }
 0x2be   : > { %s1492_s27 = smov %s1284_s30  ;;  %19 = sbr.rel (!%p17_p2) target bundleno = 3 (0x3), region = 83 }
 0x2c3   :  { %879 = vsyncpa [#allocation3], 1 }
 0x2c4   :  { %881 = vsyncpa [#allocation3 + $0x1], 1 }

</bundles_post_ra>
